<compile_context>
chip_gen: v5e
topology: v5e:2x2
jax: 0.10.0
libtpu: 0.0.40
codegen_flags: <defaults>
</compile_context>

<pallas_src>
import jax
import jax.numpy as jnp
from jax.experimental import pallas as pl
from jax.experimental.pallas import tpu as pltpu

V_TH = 1.0
BN_EPS = 1e-5
LANES = 128


def _make_kernel(H, W, width, halo, scr_rows):
    P = H * W                                    # pixels (= rows) per image
    taps = [(dy, dx) for dy in (-1, 0, 1) for dx in (-1, 0, 1)]

    def kernel(x_ref, w1_ref, a1_ref, b1_ref,
               w2_ref, a2_ref, b2_ref,
               w3_ref, a3_ref, b3_ref,
               o_ref, s1_scr):
        # ---- conv1 (1x1) + bn1 + IF spike ---------------------------------
        x = x_ref[...]                                       # (P, 128) lane-dense
        y1 = jnp.dot(x, w1_ref[...], preferred_element_type=jnp.float32)
        y1 = y1 * a1_ref[...] + b1_ref[...]
        s1 = (y1 >= V_TH).astype(jnp.float32)                # (P, width) 0/1

        # ---- conv2 (3x3, stride 1, pad 1) + bn2 + IF spike -----------------
        # No im2col: stage s1 once into a halo'd scratch (zero halo == the
        # conv's h-direction zero padding), then accumulate 9 small matmuls
        # over row-shifted views.  Halo/interior stores are sublane-aligned
        # dense slabs; re-zeroed every grid step (scratch persists across the
        # parallel grid).
        s1_scr[0:halo, :] = jnp.zeros((halo, width), jnp.float32)
        s1_scr[halo + P:scr_rows, :] = jnp.zeros((scr_rows - halo - P, width),
                                                 jnp.float32)
        s1_scr[halo:halo + P, :] = s1

        w_idx = jax.lax.broadcasted_iota(jnp.int32, (P, width), 0) % W
        m_left = w_idx >= 1            # tap reads pixel (h+dy, w-1): needs w > 0
        m_right = w_idx < W - 1        # tap reads pixel (h+dy, w+1): needs w < W-1

        acc = jnp.zeros((P, width), jnp.float32)
        for t, (dy, dx) in enumerate(taps):
            off = halo + dy * W + dx                          # static row offset
            tap = s1_scr[off:off + P, :]                      # (P, width) view load
            if dx < 0:
                tap = jnp.where(m_left, tap, 0.0)
            elif dx > 0:
                tap = jnp.where(m_right, tap, 0.0)
            acc = acc + jnp.dot(tap, w2_ref[t * width:(t + 1) * width, :],
                                preferred_element_type=jnp.float32)
        y2 = acc * a2_ref[...] + b2_ref[...]
        s2 = (y2 >= V_TH).astype(jnp.float32)                 # (P, width) 0/1

        # ---- conv3 (1x1) + bn3 + identity add + IF spike -------------------
        y3 = jnp.dot(s2, w3_ref[...], preferred_element_type=jnp.float32)
        y3 = y3 * a3_ref[...] + b3_ref[...] + x               # downsample=None
        o_ref[...] = (y3 >= V_TH).astype(jnp.float32)         # (P, 128) dense vst

    return kernel


def bottleneck_pallas(x_nhwc, params, cout):
    """x_nhwc: (N, H, W, Cin) f32; params packed/lane-padded (see __main__).
    Returns (N, H, W, cout) spike outputs (f32 values in {0, 1})."""
    w1, a1, b1, w2, a2, b2, w3, a3, b3 = params
    N, H, W, Cin = x_nhwc.shape
    cpad, width = w1.shape
    P = H * W
    M = N * P
    # identity residual only valid for downsample=None (stride 1, Cin == Cout)
    assert Cin == cout and cout <= cpad
    assert P % 8 == 0, "H*W must be a multiple of 8 sublanes"

    halo = ((W + 1 + 7) // 8) * 8                 # sublane-aligned halo rows
    scr_rows = halo + P + halo

    # wrapper-side layout plumbing: batch-fused rows, channels padded to 128 lanes
    x_rows = jnp.pad(x_nhwc.reshape(M, Cin), ((0, 0), (0, cpad - Cin)))

    def const_spec(shape):
        return pl.BlockSpec(shape, lambda n, _s=shape: (0,) * len(_s))

    out_rows = pl.pallas_call(
        _make_kernel(H, W, width, halo, scr_rows),
        out_shape=jax.ShapeDtypeStruct((M, cpad), jnp.float32),
        grid_spec=pltpu.PrefetchScalarGridSpec(
            num_scalar_prefetch=0,
            grid=(N,),                            # one image per grid step
            in_specs=[
                pl.BlockSpec((P, cpad), lambda n: (n, 0)),
                const_spec(w1.shape), const_spec(a1.shape), const_spec(b1.shape),
                const_spec(w2.shape), const_spec(a2.shape), const_spec(b2.shape),
                const_spec(w3.shape), const_spec(a3.shape), const_spec(b3.shape),
            ],
            out_specs=pl.BlockSpec((P, cpad), lambda n: (n, 0)),
            scratch_shapes=[pltpu.VMEM((scr_rows, width), jnp.float32)],
        ),
        compiler_params=pltpu.CompilerParams(
            dimension_semantics=("parallel",)),   # images split across TCs (v7x)
    )(x_rows, w1, a1, b1, w2, a2, b2, w3, a3, b3)

    return out_rows[:, :cout].reshape(N, H, W, cout)


# ---------------- pure-JAX reference (for verification) ----------------
def ref_forward(x_nhwc, raw):
    (cw1, g1, be1, m1, v1,
     cw2, g2, be2, m2, v2,
     cw3, g3, be3, m3, v3) = raw

    def conv(x, w_oihw, pad):
        w = jnp.transpose(w_oihw, (2, 3, 1, 0))  # OIHW -> HWIO
        return jax.lax.conv_general_dilated(
            x, w, window_strides=(1, 1), padding=pad,
            dimension_numbers=("NHWC", "HWIO", "NHWC"))

    def bn(x, g, b, m, v):
        return (x - m) / jnp.sqrt(v + BN_EPS) * g + b

    sn = lambda x: (x >= V_TH).astype(jnp.float32)

    out = sn(bn(conv(x_nhwc, cw1, "VALID"), g1, be1, m1, v1))
    out = sn(bn(conv(out, cw2, [(1, 1), (1, 1)]), g2, be2, m2, v2))
    out = bn(conv(out, cw3, "VALID"), g3, be3, m3, v3)
    out = out + x_nhwc
    return sn(out)


if __name__ == "__main__":
    key = jax.random.PRNGKey(0)
    keys = jax.random.split(key, 8)

    # Bottleneck(inplanes=16, planes=4) -> width=4, out = planes*4 = 16
    N, H, W = 2, 8, 8
    inplanes, planes = 16, 4
    base_width, groups = 64, 1
    width = int(planes * (base_width / 64.0)) * groups
    Cout = planes * 4   # expansion=4; equals inplanes => identity add valid

    # Quantize inputs/weights to bf16-representable f32 values (and feed the
    # SAME values to the reference): products on the MXU are then exact under
    # any pass scheme, so kernel vs. reference differs only by f32
    # accumulation-order noise (spikes are exact 0/1 either way).
    bf16r = lambda t: t.astype(jnp.bfloat16).astype(jnp.float32)

    cw1 = bf16r(0.3 * jax.random.normal(keys[0], (width, inplanes, 1, 1), jnp.float32))
    cw2 = bf16r(0.3 * jax.random.normal(keys[1], (width, width, 3, 3), jnp.float32))
    cw3 = bf16r(0.3 * jax.random.normal(keys[2], (Cout, width, 1, 1), jnp.float32))

    def bn_params(k, c):
        k1, k2, k3, k4 = jax.random.split(k, 4)
        gamma = 1.0 + 0.1 * jax.random.normal(k1, (c,), jnp.float32)
        beta = 0.1 * jax.random.normal(k2, (c,), jnp.float32)
        mean = 0.1 * jax.random.normal(k3, (c,), jnp.float32)
        var = 1.0 + 0.1 * jax.random.uniform(k4, (c,), jnp.float32)
        return gamma, beta, mean, var

    g1, be1, m1, v1 = bn_params(keys[3], width)
    g2, be2, m2, v2 = bn_params(keys[4], width)
    g3, be3, m3, v3 = bn_params(keys[5], Cout)

    # input as in PyTorch (NCHW), converted to NHWC for the kernel wrapper
    x_nchw = jax.random.normal(keys[6], (N, inplanes, H, W), jnp.float32)
    x_nhwc = bf16r(jnp.transpose(x_nchw, (0, 2, 3, 1)))

    # fold BN into per-channel scale/bias (inference-mode statistics)
    def fold(g, b, m, v):
        s = g / jnp.sqrt(v + BN_EPS)
        return s.reshape(1, -1), (b - m * s).reshape(1, -1)

    a1, b1 = fold(g1, be1, m1, v1)
    a2, b2 = fold(g2, be2, m2, v2)
    a3, b3 = fold(g3, be3, m3, v3)

    # repack weights for the kernel matmuls (lane-padded where it helps)
    w1 = jnp.pad(cw1[:, :, 0, 0].T, ((0, LANES - inplanes), (0, 0)))      # (128, width)
    w2 = jnp.transpose(cw2, (2, 3, 1, 0)).reshape(9 * width, width)       # tap-major
    w3 = jnp.pad(cw3[:, :, 0, 0].T, ((0, 0), (0, LANES - Cout)))          # (width, 128)
    a3p = jnp.pad(a3, ((0, 0), (0, LANES - Cout)))   # padded lanes -> 0 -> never spike
    b3p = jnp.pad(b3, ((0, 0), (0, LANES - Cout)))

    out = bottleneck_pallas(
        x_nhwc, (w1, a1, b1, w2, a2, b2, w3, a3p, b3p), Cout)
    out = jax.block_until_ready(out)

    ref = ref_forward(x_nhwc, (cw1, g1, be1, m1, v1,
                               cw2, g2, be2, m2, v2,
                               cw3, g3, be3, m3, v3))
    if out.shape != (N, H, W, Cout):
        raise AssertionError(f"bad output shape {out.shape}")
    if not jnp.allclose(out, ref, atol=1e-3):
        raise AssertionError("Pallas output does not match JAX reference")
    print("KERNEL_OK")
</pallas_src>

<mosaic_0001>
module attributes {stable_mosaic.version = 11 : i64} {
  func.func @kernel(%arg0: i32, %arg1: memref<64x128xf32, #tpu.memory_space<vmem>>, %arg2: memref<128x4xf32, #tpu.memory_space<vmem>>, %arg3: memref<1x4xf32, #tpu.memory_space<vmem>>, %arg4: memref<1x4xf32, #tpu.memory_space<vmem>>, %arg5: memref<36x4xf32, #tpu.memory_space<vmem>>, %arg6: memref<1x4xf32, #tpu.memory_space<vmem>>, %arg7: memref<1x4xf32, #tpu.memory_space<vmem>>, %arg8: memref<4x128xf32, #tpu.memory_space<vmem>>, %arg9: memref<1x128xf32, #tpu.memory_space<vmem>>, %arg10: memref<1x128xf32, #tpu.memory_space<vmem>>, %arg11: memref<64x128xf32, #tpu.memory_space<vmem>>, %arg12: memref<96x4xf32, #tpu.memory_space<vmem>>) attributes {dimension_semantics = [#tpu.dimension_semantics<parallel>], iteration_bounds = array<i64: 2>, scalar_prefetch = 0 : i64, scratch_operands = 1 : i64, tpu.core_type = #tpu.core_type<tc>, window_params = [{transform_indices = @transform_0, window_bounds = array<i64: 64, 128>}, {pipeline_mode = #tpu.pipeline_mode<synchronous>, transform_indices = @transform_1, window_bounds = array<i64: 128, 4>}, {pipeline_mode = #tpu.pipeline_mode<synchronous>, transform_indices = @transform_2, window_bounds = array<i64: 1, 4>}, {pipeline_mode = #tpu.pipeline_mode<synchronous>, transform_indices = @transform_3, window_bounds = array<i64: 1, 4>}, {pipeline_mode = #tpu.pipeline_mode<synchronous>, transform_indices = @transform_4, window_bounds = array<i64: 36, 4>}, {pipeline_mode = #tpu.pipeline_mode<synchronous>, transform_indices = @transform_5, window_bounds = array<i64: 1, 4>}, {pipeline_mode = #tpu.pipeline_mode<synchronous>, transform_indices = @transform_6, window_bounds = array<i64: 1, 4>}, {pipeline_mode = #tpu.pipeline_mode<synchronous>, transform_indices = @transform_7, window_bounds = array<i64: 4, 128>}, {pipeline_mode = #tpu.pipeline_mode<synchronous>, transform_indices = @transform_8, window_bounds = array<i64: 1, 128>}, {pipeline_mode = #tpu.pipeline_mode<synchronous>, transform_indices = @transform_9, window_bounds = array<i64: 1, 128>}, {transform_indices = @transform_10, window_bounds = array<i64: 64, 128>}]} {
    %c0 = arith.constant 0 : index
    %c0_0 = arith.constant 0 : index
    %0 = vector.load %arg1[%c0, %c0_0] : memref<64x128xf32, #tpu.memory_space<vmem>>, vector<64x128xf32>
    %c0_1 = arith.constant 0 : index
    %c0_2 = arith.constant 0 : index
    %1 = vector.load %arg2[%c0_1, %c0_2] : memref<128x4xf32, #tpu.memory_space<vmem>>, vector<128x4xf32>
    %cst = arith.constant dense<0.000000e+00> : vector<64x4xf32>
    %2 = tpu.matmul %0, %1, %cst {dimension_numbers = #tpu.dot_dimension_numbers<[1], [0], [0], [1], [0, 0, 1, 1], [], []>} : vector<64x128xf32>, vector<128x4xf32>, vector<64x4xf32> -> vector<64x4xf32>
    %c0_3 = arith.constant 0 : index
    %c0_4 = arith.constant 0 : index
    %3 = vector.load %arg3[%c0_3, %c0_4] : memref<1x4xf32, #tpu.memory_space<vmem>>, vector<1x4xf32>
    %4 = vector.broadcast %3 : vector<1x4xf32> to vector<64x4xf32>
    %5 = arith.mulf %2, %4 : vector<64x4xf32>
    %c0_5 = arith.constant 0 : index
    %c0_6 = arith.constant 0 : index
    %6 = vector.load %arg4[%c0_5, %c0_6] : memref<1x4xf32, #tpu.memory_space<vmem>>, vector<1x4xf32>
    %7 = vector.broadcast %6 : vector<1x4xf32> to vector<64x4xf32>
    %8 = arith.addf %5, %7 : vector<64x4xf32>
    %cst_7 = arith.constant 1.000000e+00 : f32
    %9 = vector.broadcast %cst_7 : f32 to vector<64x4xf32>
    %10 = arith.cmpf oge, %8, %9 : vector<64x4xf32>
    %11 = arith.extui %10 : vector<64x4xi1> to vector<64x4xi32>
    %12 = arith.sitofp %11 : vector<64x4xi32> to vector<64x4xf32>
    %cst_8 = arith.constant 0.000000e+00 : f32
    %13 = vector.broadcast %cst_8 : f32 to vector<16x4xf32>
    %c0_9 = arith.constant 0 : index
    %c0_10 = arith.constant 0 : index
    %14 = vector.load %arg12[%c0_9, %c0_10] : memref<96x4xf32, #tpu.memory_space<vmem>>, vector<16x4xf32>
    tpu.vector_store %arg12[%c0_9, %c0_10], %13 {strides = array<i32>} : memref<96x4xf32, #tpu.memory_space<vmem>>, vector<16x4xf32>,
    %cst_11 = arith.constant 0.000000e+00 : f32
    %15 = vector.broadcast %cst_11 : f32 to vector<16x4xf32>
    %c80 = arith.constant 80 : index
    %c0_12 = arith.constant 0 : index
    %16 = vector.load %arg12[%c80, %c0_12] : memref<96x4xf32, #tpu.memory_space<vmem>>, vector<16x4xf32>
    tpu.vector_store %arg12[%c80, %c0_12], %15 {strides = array<i32>} : memref<96x4xf32, #tpu.memory_space<vmem>>, vector<16x4xf32>,
    %c16 = arith.constant 16 : index
    %c0_13 = arith.constant 0 : index
    %17 = vector.load %arg12[%c16, %c0_13] : memref<96x4xf32, #tpu.memory_space<vmem>>, vector<64x4xf32>
    tpu.vector_store %arg12[%c16, %c0_13], %12 {strides = array<i32>} : memref<96x4xf32, #tpu.memory_space<vmem>>, vector<64x4xf32>,
    %18 = tpu.iota {dimensions = array<i32: 0>} : vector<64x4xi32>
    %c8_i32 = arith.constant 8 : i32
    %c0_i32 = arith.constant 0 : i32
    %19 = arith.cmpi eq, %c8_i32, %c0_i32 : i32
    %c1_i32 = arith.constant 1 : i32
    %20 = arith.select %19, %c1_i32, %c8_i32 : i32
    %21 = vector.broadcast %20 : i32 to vector<64x4xi32>
    %22 = arith.remsi %18, %21 : vector<64x4xi32>
    %c0_i32_14 = arith.constant 0 : i32
    %23 = vector.broadcast %c0_i32_14 : i32 to vector<64x4xi32>
    %24 = arith.cmpi ne, %22, %23 : vector<64x4xi32>
    %c0_i32_15 = arith.constant 0 : i32
    %25 = vector.broadcast %c0_i32_15 : i32 to vector<64x4xi32>
    %26 = arith.cmpi slt, %22, %25 : vector<64x4xi32>
    %c0_i32_16 = arith.constant 0 : i32
    %27 = arith.cmpi slt, %20, %c0_i32_16 : i32
    %28 = vector.broadcast %27 : i1 to vector<64x4xi1>
    %29 = vector.broadcast %28 : vector<64x4xi1> to vector<64x4xi1>
    %30 = arith.xori %26, %29 : vector<64x4xi1>
    %31 = arith.andi %30, %24 : vector<64x4xi1>
    %32 = vector.broadcast %20 : i32 to vector<64x4xi32>
    %33 = arith.addi %22, %32 : vector<64x4xi32>
    %34 = arith.select %31, %33, %22 : vector<64x4xi1>, vector<64x4xi32>
    %c1_i32_17 = arith.constant 1 : i32
    %35 = vector.broadcast %c1_i32_17 : i32 to vector<64x4xi32>
    %36 = arith.cmpi sge, %34, %35 : vector<64x4xi32>
    %c7_i32 = arith.constant 7 : i32
    %37 = vector.broadcast %c7_i32 : i32 to vector<64x4xi32>
    %38 = arith.cmpi slt, %34, %37 : vector<64x4xi32>
    %cst_18 = arith.constant 0.000000e+00 : f32
    %39 = vector.broadcast %cst_18 : f32 to vector<64x4xf32>
    %c7 = arith.constant 7 : index
    %c0_19 = arith.constant 0 : index
    %40 = vector.load %arg12[%c7, %c0_19] : memref<96x4xf32, #tpu.memory_space<vmem>>, vector<64x4xf32>
    %cst_20 = arith.constant 0.000000e+00 : f32
    %41 = vector.broadcast %cst_20 : f32 to vector<64x4xf32>
    %42 = arith.select %36, %40, %41 : vector<64x4xi1>, vector<64x4xf32>
    %c0_21 = arith.constant 0 : index
    %c0_22 = arith.constant 0 : index
    %43 = vector.load %arg5[%c0_21, %c0_22] : memref<36x4xf32, #tpu.memory_space<vmem>>, vector<4x4xf32>
    %cst_23 = arith.constant dense<0.000000e+00> : vector<64x4xf32>
    %44 = tpu.matmul %42, %43, %cst_23 {dimension_numbers = #tpu.dot_dimension_numbers<[1], [0], [0], [1], [0, 0, 1, 1], [], []>} : vector<64x4xf32>, vector<4x4xf32>, vector<64x4xf32> -> vector<64x4xf32>
    %45 = arith.addf %39, %44 : vector<64x4xf32>
    %c8 = arith.constant 8 : index
    %c0_24 = arith.constant 0 : index
    %46 = vector.load %arg12[%c8, %c0_24] : memref<96x4xf32, #tpu.memory_space<vmem>>, vector<64x4xf32>
    %c4 = arith.constant 4 : index
    %c0_25 = arith.constant 0 : index
    %47 = vector.load %arg5[%c4, %c0_25] : memref<36x4xf32, #tpu.memory_space<vmem>>, vector<4x4xf32>
    %cst_26 = arith.constant dense<0.000000e+00> : vector<64x4xf32>
    %48 = tpu.matmul %46, %47, %cst_26 {dimension_numbers = #tpu.dot_dimension_numbers<[1], [0], [0], [1], [0, 0, 1, 1], [], []>} : vector<64x4xf32>, vector<4x4xf32>, vector<64x4xf32> -> vector<64x4xf32>
    %49 = arith.addf %45, %48 : vector<64x4xf32>
    %c9 = arith.constant 9 : index
    %c0_27 = arith.constant 0 : index
    %50 = vector.load %arg12[%c9, %c0_27] : memref<96x4xf32, #tpu.memory_space<vmem>>, vector<64x4xf32>
    %cst_28 = arith.constant 0.000000e+00 : f32
    %51 = vector.broadcast %cst_28 : f32 to vector<64x4xf32>
    %52 = arith.select %38, %50, %51 : vector<64x4xi1>, vector<64x4xf32>
    %c8_29 = arith.constant 8 : index
    %c0_30 = arith.constant 0 : index
    %53 = vector.load %arg5[%c8_29, %c0_30] : memref<36x4xf32, #tpu.memory_space<vmem>>, vector<4x4xf32>
    %cst_31 = arith.constant dense<0.000000e+00> : vector<64x4xf32>
    %54 = tpu.matmul %52, %53, %cst_31 {dimension_numbers = #tpu.dot_dimension_numbers<[1], [0], [0], [1], [0, 0, 1, 1], [], []>} : vector<64x4xf32>, vector<4x4xf32>, vector<64x4xf32> -> vector<64x4xf32>
    %55 = arith.addf %49, %54 : vector<64x4xf32>
    %c15 = arith.constant 15 : index
    %c0_32 = arith.constant 0 : index
    %56 = vector.load %arg12[%c15, %c0_32] : memref<96x4xf32, #tpu.memory_space<vmem>>, vector<64x4xf32>
    %cst_33 = arith.constant 0.000000e+00 : f32
    %57 = vector.broadcast %cst_33 : f32 to vector<64x4xf32>
    %58 = arith.select %36, %56, %57 : vector<64x4xi1>, vector<64x4xf32>
    %c12 = arith.constant 12 : index
    %c0_34 = arith.constant 0 : index
    %59 = vector.load %arg5[%c12, %c0_34] : memref<36x4xf32, #tpu.memory_space<vmem>>, vector<4x4xf32>
    %cst_35 = arith.constant dense<0.000000e+00> : vector<64x4xf32>
    %60 = tpu.matmul %58, %59, %cst_35 {dimension_numbers = #tpu.dot_dimension_numbers<[1], [0], [0], [1], [0, 0, 1, 1], [], []>} : vector<64x4xf32>, vector<4x4xf32>, vector<64x4xf32> -> vector<64x4xf32>
    %61 = arith.addf %55, %60 : vector<64x4xf32>
    %c16_36 = arith.constant 16 : index
    %c0_37 = arith.constant 0 : index
    %62 = vector.load %arg12[%c16_36, %c0_37] : memref<96x4xf32, #tpu.memory_space<vmem>>, vector<64x4xf32>
    %c16_38 = arith.constant 16 : index
    %c0_39 = arith.constant 0 : index
    %63 = vector.load %arg5[%c16_38, %c0_39] : memref<36x4xf32, #tpu.memory_space<vmem>>, vector<4x4xf32>
    %cst_40 = arith.constant dense<0.000000e+00> : vector<64x4xf32>
    %64 = tpu.matmul %62, %63, %cst_40 {dimension_numbers = #tpu.dot_dimension_numbers<[1], [0], [0], [1], [0, 0, 1, 1], [], []>} : vector<64x4xf32>, vector<4x4xf32>, vector<64x4xf32> -> vector<64x4xf32>
    %65 = arith.addf %61, %64 : vector<64x4xf32>
    %c17 = arith.constant 17 : index
    %c0_41 = arith.constant 0 : index
    %66 = vector.load %arg12[%c17, %c0_41] : memref<96x4xf32, #tpu.memory_space<vmem>>, vector<64x4xf32>
    %cst_42 = arith.constant 0.000000e+00 : f32
    %67 = vector.broadcast %cst_42 : f32 to vector<64x4xf32>
    %68 = arith.select %38, %66, %67 : vector<64x4xi1>, vector<64x4xf32>
    %c20 = arith.constant 20 : index
    %c0_43 = arith.constant 0 : index
    %69 = vector.load %arg5[%c20, %c0_43] : memref<36x4xf32, #tpu.memory_space<vmem>>, vector<4x4xf32>
    %cst_44 = arith.constant dense<0.000000e+00> : vector<64x4xf32>
    %70 = tpu.matmul %68, %69, %cst_44 {dimension_numbers = #tpu.dot_dimension_numbers<[1], [0], [0], [1], [0, 0, 1, 1], [], []>} : vector<64x4xf32>, vector<4x4xf32>, vector<64x4xf32> -> vector<64x4xf32>
    %71 = arith.addf %65, %70 : vector<64x4xf32>
    %c23 = arith.constant 23 : index
    %c0_45 = arith.constant 0 : index
    %72 = vector.load %arg12[%c23, %c0_45] : memref<96x4xf32, #tpu.memory_space<vmem>>, vector<64x4xf32>
    %cst_46 = arith.constant 0.000000e+00 : f32
    %73 = vector.broadcast %cst_46 : f32 to vector<64x4xf32>
    %74 = arith.select %36, %72, %73 : vector<64x4xi1>, vector<64x4xf32>
    %c24 = arith.constant 24 : index
    %c0_47 = arith.constant 0 : index
    %75 = vector.load %arg5[%c24, %c0_47] : memref<36x4xf32, #tpu.memory_space<vmem>>, vector<4x4xf32>
    %cst_48 = arith.constant dense<0.000000e+00> : vector<64x4xf32>
    %76 = tpu.matmul %74, %75, %cst_48 {dimension_numbers = #tpu.dot_dimension_numbers<[1], [0], [0], [1], [0, 0, 1, 1], [], []>} : vector<64x4xf32>, vector<4x4xf32>, vector<64x4xf32> -> vector<64x4xf32>
    %77 = arith.addf %71, %76 : vector<64x4xf32>
    %c24_49 = arith.constant 24 : index
    %c0_50 = arith.constant 0 : index
    %78 = vector.load %arg12[%c24_49, %c0_50] : memref<96x4xf32, #tpu.memory_space<vmem>>, vector<64x4xf32>
    %c28 = arith.constant 28 : index
    %c0_51 = arith.constant 0 : index
    %79 = vector.load %arg5[%c28, %c0_51] : memref<36x4xf32, #tpu.memory_space<vmem>>, vector<4x4xf32>
    %cst_52 = arith.constant dense<0.000000e+00> : vector<64x4xf32>
    %80 = tpu.matmul %78, %79, %cst_52 {dimension_numbers = #tpu.dot_dimension_numbers<[1], [0], [0], [1], [0, 0, 1, 1], [], []>} : vector<64x4xf32>, vector<4x4xf32>, vector<64x4xf32> -> vector<64x4xf32>
    %81 = arith.addf %77, %80 : vector<64x4xf32>
    %c25 = arith.constant 25 : index
    %c0_53 = arith.constant 0 : index
    %82 = vector.load %arg12[%c25, %c0_53] : memref<96x4xf32, #tpu.memory_space<vmem>>, vector<64x4xf32>
    %cst_54 = arith.constant 0.000000e+00 : f32
    %83 = vector.broadcast %cst_54 : f32 to vector<64x4xf32>
    %84 = arith.select %38, %82, %83 : vector<64x4xi1>, vector<64x4xf32>
    %c32 = arith.constant 32 : index
    %c0_55 = arith.constant 0 : index
    %85 = vector.load %arg5[%c32, %c0_55] : memref<36x4xf32, #tpu.memory_space<vmem>>, vector<4x4xf32>
    %cst_56 = arith.constant dense<0.000000e+00> : vector<64x4xf32>
    %86 = tpu.matmul %84, %85, %cst_56 {dimension_numbers = #tpu.dot_dimension_numbers<[1], [0], [0], [1], [0, 0, 1, 1], [], []>} : vector<64x4xf32>, vector<4x4xf32>, vector<64x4xf32> -> vector<64x4xf32>
    %87 = arith.addf %81, %86 : vector<64x4xf32>
    %c0_57 = arith.constant 0 : index
    %c0_58 = arith.constant 0 : index
    %88 = vector.load %arg6[%c0_57, %c0_58] : memref<1x4xf32, #tpu.memory_space<vmem>>, vector<1x4xf32>
    %89 = vector.broadcast %88 : vector<1x4xf32> to vector<64x4xf32>
    %90 = arith.mulf %87, %89 : vector<64x4xf32>
    %c0_59 = arith.constant 0 : index
    %c0_60 = arith.constant 0 : index
    %91 = vector.load %arg7[%c0_59, %c0_60] : memref<1x4xf32, #tpu.memory_space<vmem>>, vector<1x4xf32>
    %92 = vector.broadcast %91 : vector<1x4xf32> to vector<64x4xf32>
    %93 = arith.addf %90, %92 : vector<64x4xf32>
    %cst_61 = arith.constant 1.000000e+00 : f32
    %94 = vector.broadcast %cst_61 : f32 to vector<64x4xf32>
    %95 = arith.cmpf oge, %93, %94 : vector<64x4xf32>
    %96 = arith.extui %95 : vector<64x4xi1> to vector<64x4xi32>
    %97 = arith.sitofp %96 : vector<64x4xi32> to vector<64x4xf32>
    %c0_62 = arith.constant 0 : index
    %c0_63 = arith.constant 0 : index
    %98 = vector.load %arg8[%c0_62, %c0_63] : memref<4x128xf32, #tpu.memory_space<vmem>>, vector<4x128xf32>
    %cst_64 = arith.constant dense<0.000000e+00> : vector<64x128xf32>
    %99 = tpu.matmul %97, %98, %cst_64 {dimension_numbers = #tpu.dot_dimension_numbers<[1], [0], [0], [1], [0, 0, 1, 1], [], []>} : vector<64x4xf32>, vector<4x128xf32>, vector<64x128xf32> -> vector<64x128xf32>
    %c0_65 = arith.constant 0 : index
    %c0_66 = arith.constant 0 : index
    %100 = vector.load %arg9[%c0_65, %c0_66] : memref<1x128xf32, #tpu.memory_space<vmem>>, vector<1x128xf32>
    %101 = vector.broadcast %100 : vector<1x128xf32> to vector<64x128xf32>
    %102 = arith.mulf %99, %101 : vector<64x128xf32>
    %c0_67 = arith.constant 0 : index
    %c0_68 = arith.constant 0 : index
    %103 = vector.load %arg10[%c0_67, %c0_68] : memref<1x128xf32, #tpu.memory_space<vmem>>, vector<1x128xf32>
    %104 = vector.broadcast %103 : vector<1x128xf32> to vector<64x128xf32>
    %105 = arith.addf %102, %104 : vector<64x128xf32>
    %106 = arith.addf %105, %0 : vector<64x128xf32>
    %cst_69 = arith.constant 1.000000e+00 : f32
    %107 = vector.broadcast %cst_69 : f32 to vector<64x128xf32>
    %108 = arith.cmpf oge, %106, %107 : vector<64x128xf32>
    %109 = arith.extui %108 : vector<64x128xi1> to vector<64x128xi32>
    %110 = arith.sitofp %109 : vector<64x128xi32> to vector<64x128xf32>
    %c0_70 = arith.constant 0 : index
    %c0_71 = arith.constant 0 : index
    %111 = vector.load %arg11[%c0_70, %c0_71] : memref<64x128xf32, #tpu.memory_space<vmem>>, vector<64x128xf32>
    tpu.vector_store %arg11[%c0_70, %c0_71], %110 {strides = array<i32>} : memref<64x128xf32, #tpu.memory_space<vmem>>, vector<64x128xf32>,
    return
  }
  func.func @transform_0(%arg0: i32) -> (i32, i32) {
    %c0_i32 = arith.constant 0 : i32
    %c0_i32_0 = arith.constant 0 : i32
    return %arg0, %c0_i32 : i32, i32
  }
  func.func @transform_1(%arg0: i32) -> (i32, i32) {
    %c0_i32 = arith.constant 0 : i32
    %c0_i32_0 = arith.constant 0 : i32
    %c0_i32_1 = arith.constant 0 : i32
    return %c0_i32, %c0_i32_0 : i32, i32
  }
  func.func @transform_2(%arg0: i32) -> (i32, i32) {
    %c0_i32 = arith.constant 0 : i32
    %c0_i32_0 = arith.constant 0 : i32
    %c0_i32_1 = arith.constant 0 : i32
    return %c0_i32, %c0_i32_0 : i32, i32
  }
  func.func @transform_3(%arg0: i32) -> (i32, i32) {
    %c0_i32 = arith.constant 0 : i32
    %c0_i32_0 = arith.constant 0 : i32
    %c0_i32_1 = arith.constant 0 : i32
    return %c0_i32, %c0_i32_0 : i32, i32
  }
  func.func @transform_4(%arg0: i32) -> (i32, i32) {
    %c0_i32 = arith.constant 0 : i32
    %c0_i32_0 = arith.constant 0 : i32
    %c0_i32_1 = arith.constant 0 : i32
    return %c0_i32, %c0_i32_0 : i32, i32
  }
  func.func @transform_5(%arg0: i32) -> (i32, i32) {
    %c0_i32 = arith.constant 0 : i32
    %c0_i32_0 = arith.constant 0 : i32
    %c0_i32_1 = arith.constant 0 : i32
    return %c0_i32, %c0_i32_0 : i32, i32
  }
  func.func @transform_6(%arg0: i32) -> (i32, i32) {
    %c0_i32 = arith.constant 0 : i32
    %c0_i32_0 = arith.constant 0 : i32
    %c0_i32_1 = arith.constant 0 : i32
    return %c0_i32, %c0_i32_0 : i32, i32
  }
  func.func @transform_7(%arg0: i32) -> (i32, i32) {
    %c0_i32 = arith.constant 0 : i32
    %c0_i32_0 = arith.constant 0 : i32
    %c0_i32_1 = arith.constant 0 : i32
    return %c0_i32, %c0_i32_0 : i32, i32
  }
  func.func @transform_8(%arg0: i32) -> (i32, i32) {
    %c0_i32 = arith.constant 0 : i32
    %c0_i32_0 = arith.constant 0 : i32
    %c0_i32_1 = arith.constant 0 : i32
    return %c0_i32, %c0_i32_0 : i32, i32
  }
  func.func @transform_9(%arg0: i32) -> (i32, i32) {
    %c0_i32 = arith.constant 0 : i32
    %c0_i32_0 = arith.constant 0 : i32
    %c0_i32_1 = arith.constant 0 : i32
    return %c0_i32, %c0_i32_0 : i32, i32
  }
  func.func @transform_10(%arg0: i32) -> (i32, i32) {
    %c0_i32 = arith.constant 0 : i32
    %c0_i32_0 = arith.constant 0 : i32
    return %arg0, %c0_i32 : i32, i32
  }
}

</mosaic_0001>

<bundles_post_ra>
// kernel: tpu_custom_call.1
= control target key start
LH: loop header
LB: loop body
LE: loop exit
PB: predicated region body
PF: predicated region fallthrough
CT: control target
= control target key end

     0   :  { %15 = vsyncpa [#allocation4], 0  ;;  %s2716_s0 = inlined_call_operand.vmem [shape: f32[128,128], index: 0, kind: input, shape index: {}]   ;;  %s2717_s1 = inlined_call_operand.vmem [shape: f32[128,4], index: 1, kind: input, shape index: {}]   ;;  %s2718_s2 = inlined_call_operand.vmem [shape: f32[1,4], index: 2, kind: input, shape index: {}]   ;;  %s2719_s3 = inlined_call_operand.vmem [shape: f32[1,4], index: 3, kind: input, shape index: {}]   ;;  %s2720_s4 = inlined_call_operand.vmem [shape: f32[36,4], index: 4, kind: input, shape index: {}]   ;;  %s2721_s5 = inlined_call_operand.vmem [shape: f32[1,4], index: 5, kind: input, shape index: {}]   ;;  %s2722_s6 = inlined_call_operand.vmem [shape: f32[1,4], index: 6, kind: input, shape index: {}]   ;;  %s2723_s7 = inlined_call_operand.vmem [shape: f32[4,128], index: 7, kind: input, shape index: {}]   ;;  %s2724_s8 = inlined_call_operand.vmem [shape: f32[1,128], index: 8, kind: input, shape index: {}]   ;;  %s2725_s9 = inlined_call_operand.vmem [shape: f32[1,128], index: 9, kind: input, shape index: {}]   ;;  %s2726_s10 = inlined_call_operand.hbm [shape: f32[128,128], index: 10, kind: output, shape index: {}]  }
   0x1   :  { %17 = vsyncpa [#allocation4 + $0x1], 0  ;;  %s1965_s13 = smov 0   ;;  %s1967_s14 = smov 0  }
   0x2   :  { %s1969_s15 = smov 0   ;;  %s1971_s16 = smov 0  }
   0x3 LB: > { %2730 = sst [smem:[#allocation6_spill]] %s1901_s15  ;;  %s1986_s17 = sadd.s32 4294967295, %s1905_s16   ;;  %s1905_s16 = sphi %s1971_s16, %s2772_s16   ;;  %s1901_s15 = sphi %s1969_s15, %s2769_s15   ;;  %s1897_s14 = sphi %s1967_s14, %s2771_s14   ;;  %s1893_s13 = sphi %s1965_s13, %s2770_s13  }
   0x4   : > { %s1665_s18 = sadd.s32 4294967294, %s1905_s16   ;;  %s1990_s19 = sadd.s32 1, %s1905_s16  }
   0x5   : > { %s245_s20 = sadd.s32 1, %s1901_s15  ;;  %s242_s21 = ssub.s32 %s1905_s16, %s1990_s19 }
   0x6   : > { %p255_p0 = scmp.ne.s32.totalorder %s1901_s15, %s1897_s14  ;;  %p243_p1 = scmp.eq.s32.totalorder %s242_s21, 0 }
   0x7   : > { %p256_p2 = scmp.eq.s32.totalorder %s1986_s17, 1  ;;  %p261_p3 = scmp.ne.s32.totalorder %s1897_s14, %s1893_s13 }
   0x8   : > { %p262_p4 = scmp.eq.s32.totalorder %s1665_s18, 1  ;;  %p1668_p7 = scmp.ge.s32.totalorder %s1905_s16, 1 }
   0x9   : > { %s2001_s22 = scalar_select %p243_p1, %s1901_s15, %s245_s20  }
   0xa   : > { %p2003_p5 = por %p256_p2, %p255_p0  ;;  %p2007_p6 = por %p262_p4, %p261_p3 }
   0xb   : > { %2731 = sst [smem:[#allocation7_spill]] %s2001_s22  ;;  %p316_p8 = scmp.lt.s32.totalorder %s1905_s16, 3 }
   0xd   : > { %p317_p9 = pnand %p1668_p7, %p316_p8 }
   0xe   : > { %s1670_s30 = sshll.u32 (!%p317_p9), %s1986_s17, 3  ;;  %s351_s12 = sand.u32 (!%p317_p9), 1, %s1897_s14  }
   0xf   : > { %320 = sbr.rel (%p317_p9) target bundleno = 654 (0x28e), region = 60  ;;  %p355_p10 = scmp.lt.s32.totalorder (!%p317_p9), %s1670_s30, 15 }
  0x10   : > { %s1669_s18 = sshll.u32 (!%p317_p9), %s351_s12, 6  ;;  %s1791_s21 = sshll.u32 (!%p317_p9), %s1986_s17, 6 }
  0x11   : > { %s2658_s20 = scalar_lea.vmem (!%p317_p9), [#allocation3], %s1669_s18  ;;  %s1599_s27 = scalar_lea.hbm (!%p317_p9), %s2726_s10, %s1791_s21 }
  0x12   : > { %s1600_s15 = sshll.u32 (!%p317_p9), %s2658_s20, 4  ;;  %s1602_s22 = sshll.u32 (!%p317_p9), %s1599_s27, 4  ;;  %s1601_s15 = int_to_ptr.vmem [resolvable:$true] %s1600_s15  ;;  %s1603_s22 = int_to_ptr.hbm [resolvable:$true] %s1602_s22 }
  0x13   : > { %s1588_s17 = scalar_lea.sflag (!%p317_p9), [#allocation4], %s351_s12  ;;  %s1863_s18 = scalar_lea.hbm (!%p317_p9), %s2726_s10, 128 }
  0x14   : > { %v384_v0 = vld [vmem:[%s2717_s1 + $0x78] sm:$0xff]  ;;  %v383_v1 = vld [vmem:[%s2717_s1 + $0x70] sm:$0xff]  ;;  %v382_v2 = vld [vmem:[%s2717_s1 + $0x68] sm:$0xff]  ;;  %s2774_s30 = smov (!%p355_p10, %s1670_s30), 15  ;;  %vm2728_vm0 = vcmask 1043456   ;;  %vm474_vm1 = vcmask 31744   ;;  %v487_v27 = vlaneseq }
  0x15   : > { %385 = vmatpush.msra.mxu0 %v384_v0  ;;  %v381_v3 = vld [vmem:[%s2717_s1 + $0x60] sm:$0xff]  ;;  %v380_v4 = vld [vmem:[%s2717_s1 + $0x58] sm:$0xff]  ;;  %v379_v5 = vld [vmem:[%s2717_s1 + $0x50] sm:$0xff]  ;;  %s1671_s11 = sshll.u32 %s2774_s30, 3  ;;  %v1907_v25 = vmov 0.0   ;;  %s1857_s30 = sshra.s32 %s1603_s22, 4  ;;  %s1858_s30 = int_to_ptr.hbm [resolvable:$true] %s1857_s30 }
  0x16   : > { %v378_v6 = vld [vmem:[%s2717_s1 + $0x48] sm:$0xff]  ;;  %v377_v7 = vld [vmem:[%s2717_s1 + $0x40] sm:$0xff]  ;;  %v376_v8 = vld [vmem:[%s2717_s1 + $0x38] sm:$0xff]  ;;  %s358_s26 = scalar_lea.vmem %s2716_s0, %s1671_s11  ;;  %475 = vst.msk [vmem:[#allocation2] sm:$0xff] %vm474_vm1, %v1907_v25  ;;  %v2103_v28 = vshrl.u32 %v487_v27, 7  ;;  %s1859_s28 = scalar_lea.hbm %s1858_s30, 64 }
  0x17   : > { %386 = vmatpush.msra.mxu0 %v383_v1  ;;  %v375_v9 = vld [vmem:[%s2717_s1 + $0x30] sm:$0xff]  ;;  %v374_v10 = vld [vmem:[%s2717_s1 + $0x28] sm:$0xff]  ;;  %v373_v11 = vld [vmem:[%s2717_s1 + $0x20] sm:$0xff]  ;;  %476 = vst.msk [vmem:[#allocation2 + $0x8] sm:$0xff] %vm474_vm1, %v1907_v25  ;;  %p1860_p11 = scmp.ne.s32.totalorder %s1858_s30, %s1859_s28  ;;  %p1864_p0 = scmp.lt.s32.totalorder %s1858_s30, %s2726_s10 }
  0x18   : > { %v372_v12 = vld [vmem:[%s2717_s1 + $0x18] sm:$0xff]  ;;  %v371_v13 = vld [vmem:[%s2717_s1 + $0x10] sm:$0xff]  ;;  %v370_v14 = vld [vmem:[%s2717_s1 + $0x8] sm:$0xff]  ;;  %477 = vst.msk [vmem:[#allocation2 + $0x50] sm:$0xff] %vm474_vm1, %v1907_v25  ;;  %v500_v29 = vand.u32 7, %v2103_v28  ;;  %v489_v43 = vadd.s32 8, %v2103_v28  ;;  %p1865_p1 = scmp.lt.s32.totalorder %s1863_s18, %s1859_s28 }
  0x19   : > { %387 = vmatpush.msra.mxu0 %v382_v2  ;;  %v369_v15 = vld [vmem:[%s2717_s1] sm:$0xff]  ;;  %v2068_v17 = vld [vmem:[%s358_s26 + $0x8] sm:$0xff]  ;;  %v2071_v18 = vld [vmem:[%s358_s26 + $0x10] sm:$0xff]  ;;  %478 = vst.msk [vmem:[#allocation2 + $0x58] sm:$0xff] %vm474_vm1, %v1907_v25  ;;  %v490_v51 = vadd.s32 16, %v2103_v28  ;;  %v491_v0 = vadd.s32 24, %v2103_v28  ;;  %p1861_p12 = pnand %p1860_p11, %p2003_p5 }
  0x1a   : > { %v2065_v16 = vld [vmem:[%s358_s26] sm:$0xff]  ;;  %v2074_v19 = vld [vmem:[%s358_s26 + $0x18] sm:$0xff]  ;;  %v2085_v22 = vld [vmem:[%s358_s26 + $0x28] sm:$0xff]  ;;  %vm2109_vm2 = vcmp.ge.s32.totalorder %v500_v29, 1  ;;  %v507_v46 = vand.u32 7, %v489_v43  ;;  %vm2156_vm5 = vcmp.lt.s32.totalorder %v500_v29, 7  ;;  %p1866_p2 = por %p1865_p1, %p1864_p0 }
  0x1b   : > { %388 = vmatpush.msra.mxu0 %v381_v3  ;;  %v633_v20 = vld [vmem:[%s2720_s4 + $0x4] sm:$0xf]  ;;  %v2088_v23 = vld [vmem:[%s358_s26 + $0x30] sm:$0xff]  ;;  %v2091_v24 = vld [vmem:[%s358_s26 + $0x38] sm:$0xff]  ;;  %v514_v59 = vand.u32 7, %v490_v51  ;;  %p1862_p13 = pneg %p1861_p12 }
  0x1c   : > { %1792 = vmatpush.msk.msra.mxu1 %vm2728_vm0, %v633_v20  ;;  %v2082_v21 = vld [vmem:[%s358_s26 + $0x20] sm:$0xff]  ;;  %v787_v34 = vld [vmem:[%s2720_s4 + $0x8] sm:$0xf]  ;;  %v1151_v35 = vld [vmem:[%s2720_s4 + $0x18] sm:$0xf]  ;;  %vm2152_vm4 = vcmp.ge.s32.totalorder %v507_v46, 1 }
  0x1d   : > { %389 = vmatpush.msra.mxu0 %v380_v4  ;;  %v624_v30 = vld [vmem:[%s2720_s4] sm:$0xf]  ;;  %1794 = vmatpush.msk.msra.mxu3 %vm2728_vm0, %v787_v34  ;;  %v965_v36 = vld [vmem:[%s2720_s4 + $0x10] sm:$0xf]  ;;  %v880_v37 = vld [vmem:[%s2720_s4 + $0xc] sm:$0xf]  ;;  %p1867_p3 = pnand %p1866_p2, %p1862_p13 }
  0x1e   : > { %v625_v26 = vld [vmem:[#allocation2 + $0x8] sm:$0xff]  ;;  %1793 = vmatpush.msk.msra.mxu2 %vm2728_vm0, %v624_v30  ;;  %1707 = vmatpush.msk.msrb.mxu1 %vm2728_vm0, %v880_v37  ;;  %v2138_v38 = vld [vmem:[%s2718_s2] ss:$0 sm:$0xff]  ;;  %vm2178_vm7 = vcmp.ge.s32.totalorder %v514_v59, 1  ;;  %vm2182_vm8 = vcmp.lt.s32.totalorder %v507_v46, 7  ;;  %vm2215_vm11 = vcmp.lt.s32.totalorder %v514_v59, 7 }
  0x1f   : > { %390 = vmatpush.msra.mxu0 %v379_v5  ;;  %v608_v32 = vld [vmem:[#allocation2 + $0x7] sm:$0xff]  ;;  %v2143_v39 = vld [vmem:[%s2719_s3] ss:$0 sm:$0xff]  ;;  %v1058_v59 = vld [vmem:[%s2720_s4 + $0x14] sm:$0xf] }
  0x20   : > { %v616_v33 = vsel %vm2109_vm2, %v608_v32, 0.0  ;;  %1716 = vmatpush.msk.msrb.mxu2 %vm2728_vm0, %v965_v36  ;;  %1725 = vmatpush.msk.msrb.mxu3 %vm2728_vm0, %v1058_v59 }
  0x21   : > { %391 = vmatpush.msra.mxu0 %v378_v6 }
  0x23   : > { %392 = vmatpush.msra.mxu0 %v377_v7 }
  0x25   : > { %393 = vmatpush.msra.mxu0 %v376_v8 }
  0x27   : > { %394 = vmatpush.msra.mxu0 %v375_v9  ;;  %v521_v9 = vand.u32 7, %v491_v0 }
  0x29   : > { %395 = vmatpush.msra.mxu0 %v374_v10  ;;  %vm2211_vm10 = vcmp.ge.s32.totalorder %v521_v9, 1  ;;  %vm2251_vm14 = vcmp.lt.s32.totalorder %v521_v9, 7 }
  0x2b   : > { %396 = vmatpush.msra.mxu0 %v373_v11 }
  0x2d   : > { %397 = vmatpush.msra.mxu0 %v372_v12 }
  0x2f   : > { %398 = vmatpush.msra.mxu0 %v371_v13 }
  0x31   : > { %399 = vmatpush.msra.mxu0 %v370_v14  ;;  %v492_v14 = vadd.s32 32, %v2103_v28 }
  0x33   : > { %400 = vmatpush.msra.mxu0 %v369_v15 }
  0x34   : > { %401 = vmatmul.f32.vlgmr.msra.gmra.mxu0 %v2065_v16 }
  0x35   : > { %1680 = vmatpush.msk.msrb.mxu0 %vm2728_vm0, %v633_v20 }
  0x37   : > { %1689 = vmatpush.msk.msra.mxu0 %vm2728_vm0, %v624_v30 }
  0x3c   : > { %404 = vmatmul.f32.gmra.mxu0 %v2068_v17 }
  0x44   : > { %407 = vmatmul.f32.gmra.mxu0 %v2071_v18 }
  0x4c   : > { %410 = vmatmul.f32.gmra.mxu0 %v2074_v19 }
  0x54   : > { %413 = vmatmul.f32.gmra.mxu0 %v2082_v21 }
  0x5c   : > { %416 = vmatmul.f32.gmra.mxu0 %v2085_v22 }
  0x64   : > { %419 = vmatmul.f32.gmra.mxu0 %v2088_v23 }
  0x6c   : > { %422 = vmatmul.f32.gmra.mxu0 %v2091_v24 }
  0x74   : > { %1681 = vmatmul.msk.f32.vlgmr.msrb.gmra.mxu0 %vm474_vm1, %v625_v26 }
  0x75   : > { %1698 = vmatpush.msk.msrb.mxu0 %vm2728_vm0, %v787_v34  ;;  %v528_v34 = vand.u32 7, %v492_v14 }
  0x77   : > { %vm2247_vm13 = vcmp.ge.s32.totalorder %v528_v34, 1 }
  0x7c   : > { %1690 = vmatmul.msk.f32.vlgmr.msra.gmra.mxu0 %vm474_vm1, %v616_v33 }
  0x7d   : > { %1734 = vmatpush.msk.msra.mxu0 %vm2728_vm0, %v1151_v35 }
  0xb1   : > { %v402_v40 = vpop.f32.mrf.mxu0 }
  0xb2   : > { %v430_v41 = vmul.f32 %v2138_v38, %v402_v40  ;;  %v2748_v40 = vmov 0 }
  0xb3   : > { %v2749_v40 = vsel %vm2247_vm13, 4294967295, %v2748_v40 }
  0xb4   : > { %v442_v42 = vadd.f32 %v2143_v39, %v430_v41 }
  0xb6   : > { %vm450_vm3 = vcmp.ge.f32.partialorder %v442_v42, 1.0  ;;  %v493_v42 = vadd.s32 40, %v2103_v28 }
  0xb7   : > { %v1672_v44 = vsel %vm450_vm3, 1.0, %v1907_v25 }
  0xb8   : > { %479 = vst.msk [vmem:[#allocation2 + $0x10] sm:$0xff] %vm474_vm1, %v1672_v44 }
  0xb9   : > { %v405_v45 = vpop.f32.mrf.mxu0 }
  0xba   : > { %v431_v47 = vmul.f32 %v2138_v38, %v405_v45 }
  0xbc   : > { %v443_v48 = vadd.f32 %v2143_v39, %v431_v47 }
  0xbe   : > { %vm451_vm6 = vcmp.ge.f32.partialorder %v443_v48, 1.0 }
  0xbf   : > { %v1673_v52 = vsel %vm451_vm6, 1.0, %v1907_v25  ;;  %v2162_v53 = vld [vmem:[#allocation2 + $0x10] sm:$0xff]  ;;  %vm2299_vm6 = vcmp.lt.s32.totalorder %v528_v34, 7 }
  0xc0   : > { %v2164_v54 = vld [vmem:[#allocation2 + $0xf] sm:$0xff]  ;;  %480 = vst.msk [vmem:[#allocation2 + $0x18] sm:$0xff] %vm474_vm1, %v1673_v52  ;;  %1682 = vmatmul.msk.f32.vlgmr.msra.gmra.mxu1 %vm474_vm1, %v2162_v53 }
  0xc1   : > { %v771_v55 = vld [vmem:[#allocation2 + $0x9] sm:$0xff]  ;;  %v617_v56 = vsel %vm2152_vm4, %v2164_v54, 0.0  ;;  %v408_v58 = vpop.f32.mrf.mxu0 }
  0xc2   : > { %v779_v57 = vsel %vm2156_vm5, %v771_v55, 0.0  ;;  %1691 = vmatmul.msk.f32.vlgmr.msra.gmra.mxu2 %vm474_vm1, %v617_v56  ;;  %v432_v60 = vmul.f32 %v2138_v38, %v408_v58  ;;  %v535_v55 = vand.u32 7, %v493_v42  ;;  %v1329_v58 = vld [vmem:[%s2720_s4 + $0x20] sm:$0xf] }
  0xc3   : > { %1699 = vmatmul.msk.f32.vlgmr.msrb.gmra.mxu0 %vm474_vm1, %v779_v57  ;;  %1752 = vmatpush.msk.msra.mxu2 %vm2728_vm0, %v1329_v58 }
  0xc4   : > { %v444_v61 = vadd.f32 %v2143_v39, %v432_v60  ;;  %v1236_v60 = vld [vmem:[%s2720_s4 + $0x1c] sm:$0xf]  ;;  %vm2295_vm3 = vcmp.ge.s32.totalorder %v535_v55, 1 }
  0xc5   : > { %1743 = vmatpush.msk.msra.mxu1 %vm2728_vm0, %v1236_v60 }
  0xc6   : > { %vm452_vm9 = vcmp.ge.f32.partialorder %v444_v61, 1.0 }
  0xc7   : > { %v1674_v1 = vsel %vm452_vm9, 1.0, %v1907_v25  ;;  %v2188_v2 = vld [vmem:[#allocation2 + $0x18] sm:$0xff] }
  0xc8   : > { %v2190_v3 = vld [vmem:[#allocation2 + $0x17] sm:$0xff]  ;;  %481 = vst.msk [vmem:[#allocation2 + $0x20] sm:$0xff] %vm474_vm1, %v1674_v1  ;;  %1683 = vmatmul.msk.f32.gmra.mxu1 %vm474_vm1, %v2188_v2 }
  0xc9   : > { %v2192_v4 = vld [vmem:[#allocation2 + $0x11] sm:$0xff]  ;;  %v618_v5 = vsel %vm2178_vm7, %v2190_v3, 0.0  ;;  %v1143_v7 = vsel %vm2109_vm2, %v2190_v3, 0.0  ;;  %v411_v8 = vpop.f32.mrf.mxu0 }
  0xca   : > { %v780_v6 = vsel %vm2182_vm8, %v2192_v4, 0.0  ;;  %1692 = vmatmul.msk.f32.gmra.mxu2 %vm474_vm1, %v618_v5  ;;  %v433_v10 = vmul.f32 %v2138_v38, %v411_v8  ;;  %v494_v5 = vadd.s32 48, %v2103_v28 }
  0xcb   : > { %1700 = vmatmul.msk.f32.vlgmr.msra.gmra.mxu3 %vm474_vm1, %v780_v6  ;;  %1735 = vmatmul.msk.f32.vlgmr.msra.gmra.mxu0 %vm474_vm1, %v1143_v7 }
  0xcc   : > { %v445_v11 = vadd.f32 %v2143_v39, %v433_v10 }
  0xce   : > { %vm453_vm12 = vcmp.ge.f32.partialorder %v445_v11, 1.0 }
  0xcf   : > { %v1675_v15 = vsel %vm453_vm12, 1.0, %v1907_v25  ;;  %v2221_v20 = vld [vmem:[#allocation2 + $0x20] sm:$0xff] }
  0xd0   : > { %v2223_v26 = vld [vmem:[#allocation2 + $0x1f] sm:$0xff]  ;;  %482 = vst.msk [vmem:[#allocation2 + $0x28] sm:$0xff] %vm474_vm1, %v1675_v15  ;;  %1684 = vmatmul.msk.f32.gmra.mxu1 %vm474_vm1, %v2221_v20 }
  0xd1   : > { %v2225_v27 = vld [vmem:[#allocation2 + $0x19] sm:$0xff]  ;;  %v619_v29 = vsel %vm2211_vm10, %v2223_v26, 0.0  ;;  %v1144_v32 = vsel %vm2152_vm4, %v2223_v26, 0.0  ;;  %v414_v33 = vpop.f32.mrf.mxu0 }
  0xd2   : > { %v781_v30 = vsel %vm2215_vm11, %v2225_v27, 0.0  ;;  %1693 = vmatmul.msk.f32.gmra.mxu2 %vm474_vm1, %v619_v29  ;;  %v1321_v35 = vsel %vm2156_vm5, %v2225_v27, 0.0  ;;  %v434_v36 = vmul.f32 %v2138_v38, %v414_v33  ;;  %v542_v29 = vand.u32 7, %v494_v5 }
  0xd3   : > { %1701 = vmatmul.msk.f32.gmra.mxu3 %vm474_vm1, %v781_v30  ;;  %1736 = vmatmul.msk.f32.gmra.mxu0 %vm474_vm1, %v1144_v32  ;;  %v1051_v49 = vsel %vm2182_vm8, %v2225_v27, 0.0 }
  0xd4   : > { %v446_v37 = vadd.f32 %v2143_v39, %v434_v36  ;;  %vm2331_vm12 = vcmp.ge.s32.totalorder %v542_v29, 1  ;;  %vm2371_vm0 = vcmp.lt.s32.totalorder %v542_v29, 7 }
  0xd6   : > { %vm454_vm15 = vcmp.ge.f32.partialorder %v446_v37, 1.0  ;;  %v495_v37 = vadd.s32 56, %v2103_v28 }
  0xd7   : > { %v1676_v43 = vsel %vm454_vm15, 1.0, %v1907_v25  ;;  %v2257_v44 = vld [vmem:[#allocation2 + $0x28] sm:$0xff]  ;;  %vm2335_vm15 = vcmp.lt.s32.totalorder %v535_v55, 7 }
  0xd8   : > { %v2259_v45 = vld [vmem:[#allocation2 + $0x27] sm:$0xff]  ;;  %483 = vst.msk [vmem:[#allocation2 + $0x30] sm:$0xff] %vm474_vm1, %v1676_v43  ;;  %1685 = vmatmul.msk.f32.gmra.mxu1 %vm474_vm1, %v2257_v44 }
  0xd9   : > { %v2261_v46 = vld [vmem:[#allocation2 + $0x21] sm:$0xff]  ;;  %v620_v47 = vsel %vm2247_vm13, %v2259_v45, 0.0  ;;  %v1145_v51 = vsel %vm2178_vm7, %v2259_v45, 0.0  ;;  %v417_v52 = vpop.f32.mrf.mxu0  ;;  %v875_v62 = vsel %vm2211_vm10, %v2259_v45, 0.0 }
  0xda   : > { %v782_v48 = vsel %vm2251_vm14, %v2261_v46, 0.0  ;;  %1694 = vmatmul.msk.f32.gmra.mxu2 %vm474_vm1, %v620_v47  ;;  %v1322_v56 = vsel %vm2182_vm8, %v2261_v46, 0.0  ;;  %v435_v57 = vmul.f32 %v2138_v38, %v417_v52 }
  0xdb   : > { %1702 = vmatmul.msk.f32.gmra.mxu3 %vm474_vm1, %v782_v48  ;;  %1737 = vmatmul.msk.f32.gmra.mxu0 %vm474_vm1, %v1145_v51 }
  0xdc   : > { %v447_v61 = vadd.f32 %v2143_v39, %v435_v57  ;;  %v549_v57 = vand.u32 7, %v495_v37 }
  0xde   : > { %vm455_vm9 = vcmp.ge.f32.partialorder %v447_v61, 1.0 }
  0xdf   : > { %v1677_v6 = vsel %vm455_vm9, 1.0, %v1907_v25  ;;  %v2305_v7 = vld [vmem:[#allocation2 + $0x30] sm:$0xff] }
  0xe0   : > { %v2307_v8 = vld [vmem:[#allocation2 + $0x2f] sm:$0xff]  ;;  %484 = vst.msk [vmem:[#allocation2 + $0x38] sm:$0xff] %vm474_vm1, %v1677_v6  ;;  %1686 = vmatmul.msk.f32.gmra.mxu1 %vm474_vm1, %v2305_v7 }
  0xe1   : > { %v2309_v9 = vld [vmem:[#allocation2 + $0x29] sm:$0xff]  ;;  %v621_v10 = vsel %vm2295_vm3, %v2307_v8, 0.0  ;;  %v1146_v14 = vsel %vm2211_vm10, %v2307_v8, 0.0  ;;  %v420_v15 = vpop.f32.mrf.mxu0 }
  0xe2   : > { %v783_v11 = vsel %vm2299_vm6, %v2309_v9, 0.0  ;;  %1695 = vmatmul.msk.f32.gmra.mxu2 %vm474_vm1, %v621_v10  ;;  %v1323_v30 = vsel %vm2215_vm11, %v2309_v9, 0.0  ;;  %v436_v32 = vmul.f32 %v2138_v38, %v420_v15  ;;  %v1053_v12 = vsel %vm2251_vm14, %v2309_v9, 0.0 }
  0xe3   : > { %1703 = vmatmul.msk.f32.gmra.mxu3 %vm474_vm1, %v783_v11  ;;  %1738 = vmatmul.msk.f32.gmra.mxu0 %vm474_vm1, %v1146_v14 }
  0xe4   : > { %v448_v33 = vadd.f32 %v2143_v39, %v436_v32 }
  0xe6   : > { %vm456_vm9 = vcmp.ge.f32.partialorder %v448_v33, 1.0  ;;  %v872_v33 = vsel %vm2109_vm2, %v2164_v54, 0.0  ;;  %v873_v54 = vsel %vm2152_vm4, %v2190_v3, 0.0  ;;  %vm2766_vm2 = vnez %v2749_v40 }
  0xe7   : > { %v1678_v42 = vsel %vm456_vm9, 1.0, %v1907_v25  ;;  %v2341_v43 = vld [vmem:[#allocation2 + $0x38] sm:$0xff]  ;;  %vm2367_vm9 = vcmp.ge.s32.totalorder %v549_v57, 1  ;;  %vm2767_vm4 = vcmask 1043456  }
  0xe8   : > { %v2343_v47 = vld [vmem:[#allocation2 + $0x37] sm:$0xff]  ;;  %485 = vst.msk [vmem:[#allocation2 + $0x40] sm:$0xff] %vm474_vm1, %v1678_v42  ;;  %1687 = vmatmul.msk.f32.gmra.mxu1 %vm474_vm1, %v2341_v43 }
  0xe9   : > { %v2345_v48 = vld [vmem:[#allocation2 + $0x31] sm:$0xff]  ;;  %v622_v51 = vsel %vm2331_vm12, %v2343_v47, 0.0  ;;  %v1147_v52 = vsel %vm2247_vm13, %v2343_v47, 0.0  ;;  %v423_v55 = vpop.f32.mrf.mxu0  ;;  %v877_v45 = vsel %vm2295_vm3, %v2343_v47, 0.0 }
  0xea   : > { %v784_v28 = vsel %vm2335_vm15, %v2345_v48, 0.0  ;;  %1696 = vmatmul.msk.f32.gmra.mxu2 %vm474_vm1, %v622_v51  ;;  %v1324_v58 = vsel %vm2251_vm14, %v2345_v48, 0.0  ;;  %v437_v59 = vmul.f32 %v2138_v38, %v423_v55  ;;  %v876_v55 = vsel %vm2766_vm2, %v2307_v8, 0.0 }
  0xeb   : > { %1704 = vmatmul.msk.f32.gmra.mxu3 %vm474_vm1, %v784_v28  ;;  %1739 = vmatmul.msk.f32.gmra.mxu0 %vm474_vm1, %v1147_v52  ;;  %v1050_v52 = vsel %vm2156_vm5, %v2192_v4, 0.0  ;;  %v1054_v40 = vsel %vm2299_vm6, %v2345_v48, 0.0  ;;  %v1320_v48 = vld [vmem:[#allocation2 + $0x51] sm:$0xff] }
  0xec   : > { %v449_v60 = vadd.f32 %v2143_v39, %v437_v59 }
  0xee   : > { %vm457_vm13 = vcmp.ge.f32.partialorder %v449_v60, 1.0 }
  0xef   : > { %v1679_v6 = vsel %vm457_vm13, 1.0, %v1907_v25  ;;  %v2376_v10 = vld [vmem:[#allocation2 + $0x40] sm:$0xff]  ;;  %vm2396_vm13 = vcmp.lt.s32.totalorder %v549_v57, 7 }
  0xf0   : > { %v615_v11 = vld [vmem:[#allocation2 + $0x3f] sm:$0xff]  ;;  %486 = vst.msk [vmem:[#allocation2 + $0x48] sm:$0xff] %vm474_vm1, %v1679_v6  ;;  %1688 = vmatmul.msk.f32.gmra.mxu1 %vm474_vm1, %v2376_v10 }
  0xf1   : > { %v2378_v14 = vld [vmem:[#allocation2 + $0x39] sm:$0xff]  ;;  %v623_v38 = vsel %vm2367_vm9, %v615_v11, 0.0  ;;  %v1148_v15 = vsel %vm2295_vm3, %v615_v11, 0.0  ;;  %v878_v8 = vsel %vm2331_vm12, %v615_v11, 0.0 }
  0xf2   : > { %v785_v39 = vsel %vm2371_vm0, %v2378_v14, 0.0  ;;  %1697 = vmatmul.msk.f32.gmra.mxu2 %vm474_vm1, %v623_v38  ;;  %v1325_v29 = vsel %vm2299_vm6, %v2378_v14, 0.0  ;;  %v1055_v0 = vsel %vm2335_vm15, %v2378_v14, 0.0  ;;  %v1235_v38 = vld [vmem:[#allocation2 + $0x50] sm:$0xff] }
  0xf3   : > { %1705 = vmatmul.msk.f32.gmra.mxu3 %vm474_vm1, %v785_v39  ;;  %1740 = vmatmul.msk.f32.gmra.mxu0 %vm474_vm1, %v1148_v15  ;;  %v1328_v39 = vsel %vm2396_vm13, %v1320_v48, 0.0  ;;  %v2589_v48 = vld [vmem:[%s2721_s5] ss:$0 sm:$0xff] }
  0xf7   : > { %v2403_v37 = vld [vmem:[#allocation2 + $0x41] sm:$0xff]  ;;  %v1142_v3 = vld [vmem:[#allocation2 + $0x4f] sm:$0xff] }
  0xf8   : > { %v1141_v42 = vld [vmem:[#allocation2 + $0x47] sm:$0xff]  ;;  %1708 = vmatmul.msk.f32.vlgmr.msrb.gmra.mxu1 %vm474_vm1, %v872_v33  ;;  %v786_v51 = vsel %vm2396_vm13, %v2403_v37, 0.0  ;;  %v1326_v31 = vsel %vm2335_vm15, %v2403_v37, 0.0  ;;  %v1150_v4 = vsel %vm2367_vm9, %v1142_v3, 0.0  ;;  %v1056_v34 = vsel %vm2371_vm0, %v2403_v37, 0.0 }
  0xf9   : > { %v1149_v28 = vsel %vm2331_vm12, %v1141_v42, 0.0  ;;  %v879_v47 = vsel %vm2367_vm9, %v1141_v42, 0.0  ;;  %v964_v57 = vld [vmem:[#allocation2 + $0x48] sm:$0xff] }
  0xfa   : > { %1717 = vmatmul.msk.f32.vlgmr.msrb.gmra.mxu2 %vm474_vm1, %v2162_v53  ;;  %v874_v53 = vsel %vm2178_vm7, %v2223_v26, 0.0  ;;  %v1052_v26 = vsel %vm2215_vm11, %v2261_v46, 0.0  ;;  %v1049_v59 = vld [vmem:[#allocation2 + $0x49] sm:$0xff] }
  0xfb   : > { %1706 = vmatmul.msk.f32.gmra.mxu3 %vm474_vm1, %v786_v51  ;;  %1741 = vmatmul.msk.f32.gmra.mxu0 %vm474_vm1, %v1149_v28  ;;  %v1057_v60 = vsel %vm2396_vm13, %v1049_v59, 0.0  ;;  %v1327_v36 = vsel %vm2371_vm0, %v1049_v59, 0.0 }
 0x100   : > { %1709 = vmatmul.msk.f32.gmra.mxu1 %vm474_vm1, %v873_v54 }
 0x102   : > { %1718 = vmatmul.msk.f32.gmra.mxu2 %vm474_vm1, %v2188_v2 }
 0x103   : > { %1726 = vmatmul.msk.f32.vlgmr.msrb.gmra.mxu3 %vm474_vm1, %v1050_v52  ;;  %1742 = vmatmul.msk.f32.gmra.mxu0 %vm474_vm1, %v1150_v4 }
 0x108   : > { %1710 = vmatmul.msk.f32.gmra.mxu1 %vm474_vm1, %v874_v53  ;;  %v679_v53 = vpop.f32.mrf.mxu0 }
 0x10a   : > { %1719 = vmatmul.msk.f32.gmra.mxu2 %vm474_vm1, %v2221_v20 }
 0x10b   : > { %1727 = vmatmul.msk.f32.gmra.mxu3 %vm474_vm1, %v1051_v49 }
 0x110   : > { %1711 = vmatmul.msk.f32.gmra.mxu1 %vm474_vm1, %v875_v62  ;;  %v747_v62 = vpop.f32.mrf.mxu0 }
 0x112   : > { %1720 = vmatmul.msk.f32.gmra.mxu2 %vm474_vm1, %v2257_v44 }
 0x113   : > { %1728 = vmatmul.msk.f32.gmra.mxu3 %vm474_vm1, %v1052_v26 }
 0x118   : > { %1712 = vmatmul.msk.f32.gmra.mxu1 %vm474_vm1, %v876_v55 }
 0x11a   : > { %1721 = vmatmul.msk.f32.gmra.mxu2 %vm474_vm1, %v2305_v7 }
 0x11b   : > { %1729 = vmatmul.msk.f32.gmra.mxu3 %vm474_vm1, %v1053_v12 }
 0x120   : > { %1713 = vmatmul.msk.f32.gmra.mxu1 %vm474_vm1, %v877_v45 }
 0x122   : > { %1722 = vmatmul.msk.f32.gmra.mxu2 %vm474_vm1, %v2341_v43 }
 0x123   : > { %1730 = vmatmul.msk.f32.gmra.mxu3 %vm474_vm1, %v1054_v40 }
 0x128   : > { %1714 = vmatmul.msk.f32.gmra.mxu1 %vm474_vm1, %v878_v8 }
 0x12a   : > { %1723 = vmatmul.msk.f32.gmra.mxu2 %vm474_vm1, %v2376_v10 }
 0x12b   : > { %1731 = vmatmul.msk.f32.gmra.mxu3 %vm474_vm1, %v1055_v0 }
 0x130   : > { %1715 = vmatmul.msk.f32.gmra.mxu1 %vm474_vm1, %v879_v47  ;;  %v748_v47 = vadd.f32 %v747_v62, %v679_v53 }
 0x132   : > { %1724 = vmatmul.msk.f32.gmra.mxu2 %vm474_vm1, %v964_v57 }
 0x133   : > { %1732 = vmatmul.msk.f32.gmra.mxu3 %vm474_vm1, %v1056_v34 }
 0x138   : > { %1744 = vmatmul.msk.f32.vlgmr.msra.gmra.mxu1 %vm474_vm1, %v2188_v2 }
 0x13a   : > { %1753 = vmatmul.msk.f32.vlgmr.msra.gmra.mxu2 %vm474_vm1, %v1321_v35 }
 0x13b   : > { %1733 = vmatmul.msk.f32.gmra.mxu3 %vm474_vm1, %v1057_v60 }
 0x13d   : > { %v682_v61 = vpop.f32.mrf.mxu1 }
 0x140   : > { %1745 = vmatmul.msk.f32.gmra.mxu1 %vm474_vm1, %v2221_v20  ;;  %v832_v45 = vpop.f32.mrf.mxu0 }
 0x142   : > { %1754 = vmatmul.msk.f32.gmra.mxu2 %vm474_vm1, %v1322_v56 }
 0x145   : > { %v750_v2 = vpop.f32.mrf.mxu2  ;;  %v685_v11 = vpop.f32.mrf.mxu1 }
 0x146   : > { %v2505_v6 = vadd.f32 %v750_v2, %v682_v61  ;;  %v856_v61 = vadd.f32 %v832_v45, %v748_v47 }
 0x148   : > { %1746 = vmatmul.msk.f32.gmra.mxu1 %vm474_vm1, %v2257_v44 }
 0x14a   : > { %1755 = vmatmul.msk.f32.gmra.mxu2 %vm474_vm1, %v1323_v30  ;;  %v1454_v30 = vld [vmem:[%s2723_s7] sm:$0xf] }
 0x14b   : > { %1769 = vmatpush.msk.msra.mxu3 %vm2767_vm4, %v1454_v30 }
 0x14d   : > { %v753_v50 = vpop.f32.mrf.mxu2  ;;  %v688_v63 = vpop.f32.mrf.mxu1 }
 0x14e   : > { %v2514_v20 = vadd.f32 %v753_v50, %v685_v11  ;;  %v835_v56 = vpop.f32.mrf.mxu3 }
 0x150   : > { %1747 = vmatmul.msk.f32.gmra.mxu1 %vm474_vm1, %v2305_v7 }
 0x152   : > { %1756 = vmatmul.msk.f32.gmra.mxu2 %vm474_vm1, %v1324_v58 }
 0x155   : > { %v756_v27 = vpop.f32.mrf.mxu2  ;;  %v691_v13 = vpop.f32.mrf.mxu1 }
 0x156   : > { %v2523_v35 = vadd.f32 %v756_v27, %v688_v63 }
 0x158   : > { %1748 = vmatmul.msk.f32.gmra.mxu1 %vm474_vm1, %v2341_v43  ;;  %v838_v43 = vpop.f32.mrf.mxu3 }
 0x15a   : > { %1757 = vmatmul.msk.f32.gmra.mxu2 %vm474_vm1, %v1325_v29 }
 0x15d   : > { %v759_v44 = vpop.f32.mrf.mxu2  ;;  %v694_v41 = vpop.f32.mrf.mxu1 }
 0x15e   : > { %v2532_v46 = vadd.f32 %v759_v44, %v691_v13  ;;  %v857_v44 = vadd.f32 %v835_v56, %v2505_v6  ;;  %v858_v6 = vadd.f32 %v838_v43, %v2514_v20 }
 0x160   : > { %1749 = vmatmul.msk.f32.gmra.mxu1 %vm474_vm1, %v2376_v10  ;;  %v2557_v15 = vpop.f32.mrf.mxu3 }
 0x161   : > { %v859_v20 = vadd.f32 %v2557_v15, %v2523_v35 }
 0x162   : > { %1758 = vmatmul.msk.f32.gmra.mxu2 %vm474_vm1, %v1326_v31 }
 0x165   : > { %v762_v7 = vpop.f32.mrf.mxu2  ;;  %v697_v9 = vpop.f32.mrf.mxu1 }
 0x166   : > { %v2541_v1 = vadd.f32 %v762_v7, %v694_v41 }
 0x168   : > { %1750 = vmatmul.msk.f32.gmra.mxu1 %vm474_vm1, %v964_v57  ;;  %v2561_v37 = vpop.f32.mrf.mxu3  ;;  %v1196_v57 = vpop.f32.mrf.mxu0 }
 0x169   : > { %v860_v35 = vadd.f32 %v2561_v37, %v2532_v46 }
 0x16a   : > { %1759 = vmatmul.msk.f32.gmra.mxu2 %vm474_vm1, %v1327_v36 }
 0x16d   : > { %v765_v58 = vpop.f32.mrf.mxu2  ;;  %v700_v14 = vpop.f32.mrf.mxu1 }
 0x16e   : > { %v2551_v10 = vadd.f32 %v765_v58, %v697_v9 }
 0x170   : > { %1751 = vmatmul.msk.f32.gmra.mxu1 %vm474_vm1, %v1235_v38  ;;  %v2563_v54 = vpop.f32.mrf.mxu3  ;;  %v1199_v13 = vpop.f32.mrf.mxu0 }
 0x171   : > { %v861_v37 = vadd.f32 %v2563_v54, %v2541_v1 }
 0x172   : > { %1760 = vmatmul.msk.f32.gmra.mxu2 %vm474_vm1, %v1328_v39  ;;  %v2594_v39 = vld [vmem:[%s2722_s6] ss:$0 sm:$0xff] }
 0x175   : > { %v768_v29 = vpop.f32.mrf.mxu2  ;;  %v925_v33 = vpop.f32.mrf.mxu1 }
 0x176   : > { %v2559_v5 = vadd.f32 %v768_v29, %v700_v14  ;;  %v949_v2 = vadd.f32 %v925_v33, %v856_v61 }
 0x178   : > { %v2565_v49 = vpop.f32.mrf.mxu3  ;;  %v1202_v33 = vpop.f32.mrf.mxu0 }
 0x179   : > { %v862_v54 = vadd.f32 %v2565_v49, %v2551_v10 }
 0x17d   : > { %v1010_v42 = vpop.f32.mrf.mxu2  ;;  %v928_v51 = vpop.f32.mrf.mxu1 }
 0x17e   : > { %v1034_v11 = vadd.f32 %v1010_v42, %v949_v2  ;;  %v950_v7 = vadd.f32 %v928_v51, %v857_v44 }
 0x180   : > { %v2569_v26 = vpop.f32.mrf.mxu3 }
 0x181   : > { %v863_v49 = vadd.f32 %v2569_v26, %v2559_v5 }
 0x185   : > { %v1013_v28 = vpop.f32.mrf.mxu2  ;;  %v931_v31 = vpop.f32.mrf.mxu1 }
 0x186   : > { %v1035_v30 = vadd.f32 %v1013_v28, %v950_v7  ;;  %v951_v42 = vadd.f32 %v931_v31, %v858_v6 }
 0x188   : > { %v1103_v40 = vpop.f32.mrf.mxu3 }
 0x189   : > { %v1127_v63 = vadd.f32 %v1103_v40, %v1034_v11 }
 0x18b   : > { %v1220_v9 = vadd.f32 %v1196_v57, %v1127_v63 }
 0x18d   : > { %v1016_v32 = vpop.f32.mrf.mxu2  ;;  %v934_v52 = vpop.f32.mrf.mxu1 }
 0x18e   : > { %v1036_v62 = vadd.f32 %v1016_v32, %v951_v42  ;;  %v952_v31 = vadd.f32 %v934_v52, %v859_v20  ;;  %v1205_v32 = vpop.f32.mrf.mxu0 }
 0x190   : > { %v1106_v60 = vpop.f32.mrf.mxu3 }
 0x191   : > { %v1128_v14 = vadd.f32 %v1106_v60, %v1035_v30 }
 0x193   : > { %v1221_v28 = vadd.f32 %v1199_v13, %v1128_v14 }
 0x195   : > { %v1019_v3 = vpop.f32.mrf.mxu2  ;;  %v2567_v4 = vpop.f32.mrf.mxu1 }
 0x196   : > { %v1037_v63 = vadd.f32 %v1019_v3, %v952_v31  ;;  %v953_v52 = vadd.f32 %v2567_v4, %v860_v35 }
 0x198   : > { %v1109_v41 = vpop.f32.mrf.mxu3 }
 0x199   : > { %v1129_v57 = vadd.f32 %v1109_v41, %v1036_v62 }
 0x19b   : > { %v1222_v2 = vadd.f32 %v1202_v33, %v1129_v57 }
 0x19d   : > { %v2571_v55 = vpop.f32.mrf.mxu2  ;;  %v2573_v12 = vpop.f32.mrf.mxu1 }
 0x1a0   : > { %v1112_v53 = vpop.f32.mrf.mxu3 }
 0x1a1   : > { %v1130_v7 = vadd.f32 %v1112_v53, %v1037_v63 }
 0x1a5   : > { %v2575_v8 = vpop.f32.mrf.mxu2  ;;  %v2577_v0 = vpop.f32.mrf.mxu1 }
 0x1a6   : > { %v955_v20 = vadd.f32 %v2577_v0, %v862_v54 }
 0x1a8   : > { %v1115_v13 = vpop.f32.mrf.mxu3 }
 0x1ad   : > { %v2579_v34 = vpop.f32.mrf.mxu2  ;;  %v2581_v59 = vpop.f32.mrf.mxu1 }
 0x1ae   : > { %v1040_v31 = vadd.f32 %v2579_v34, %v955_v20 }
 0x1b0   : > { %v1118_v46 = vpop.f32.mrf.mxu3 }
 0x1b5   : > { %v2583_v50 = vpop.f32.mrf.mxu2  ;;  %v1281_v27 = vpop.f32.mrf.mxu1 }
 0x1b6   : > { %v1305_v36 = vadd.f32 %v1281_v27, %v1220_v9 }
 0x1bd   : > { %v1374_v58 = vpop.f32.mrf.mxu2  ;;  %v1284_v29 = vpop.f32.mrf.mxu1 }
 0x1be   : > { %v1398_v38 = vadd.f32 %v1374_v58, %v1305_v36  ;;  %v1306_v45 = vadd.f32 %v1284_v29, %v1221_v28  ;;  %v1223_v36 = vadd.f32 %v1205_v32, %v1130_v7  ;;  %v1038_v58 = vadd.f32 %v2571_v55, %v953_v52 }
 0x1c0   : > { %v1410_v56 = vmul.f32 %v2589_v48, %v1398_v38  ;;  %v1208_v38 = vpop.f32.mrf.mxu0 }
 0x1c2   : > { %v1422_v51 = vadd.f32 %v2594_v39, %v1410_v56  ;;  %v1131_v56 = vadd.f32 %v1115_v13, %v1038_v58 }
 0x1c4   : > { %vm1430_vm0 = vcmp.ge.f32.partialorder %v1422_v51, 1.0  ;;  %v954_v51 = vadd.f32 %v2573_v12, %v861_v37  ;;  %v1224_v55 = vadd.f32 %v1208_v38, %v1131_v56 }
 0x1c5   : > { %v1377_v40 = vpop.f32.mrf.mxu2  ;;  %v1761_v47 = vsel %vm1430_vm0, 1.0, %v1907_v25  ;;  %v1287_v61 = vpop.f32.mrf.mxu1 }
 0x1c6   : > { %v1399_v60 = vadd.f32 %v1377_v40, %v1306_v45  ;;  %1770 = vmatmul.msk.f32.vlgmr.msra.gmra.mxu3 %vm474_vm1, %v1761_v47  ;;  %v1307_v27 = vadd.f32 %v1287_v61, %v1222_v2  ;;  %v1039_v53 = vadd.f32 %v2575_v8, %v954_v51  ;;  %v1121_v61 = vpop.f32.mrf.mxu3 }
 0x1c7   : > { %v1133_v63 = vadd.f32 %v1121_v61, %v1040_v31 }
 0x1c8   : > { %v1411_v43 = vmul.f32 %v2589_v48, %v1399_v60  ;;  %v1132_v47 = vadd.f32 %v1118_v46, %v1039_v53  ;;  %v1211_v1 = vpop.f32.mrf.mxu0  ;;  %v1842_v46 = vld [vmem:[%s2725_s9] ss:$0 sm:$0xff] }
 0x1ca   : > { %v1423_v11 = vadd.f32 %v2594_v39, %v1411_v43  ;;  %v1225_v8 = vadd.f32 %v1211_v1, %v1132_v47 }
 0x1cc   : > { %vm1431_vm5 = vcmp.ge.f32.partialorder %v1423_v11, 1.0 }
 0x1cd   : > { %v1380_v44 = vpop.f32.mrf.mxu2  ;;  %v1762_v41 = vsel %vm1431_vm5, 1.0, %v1907_v25  ;;  %v1290_v30 = vpop.f32.mrf.mxu1 }
 0x1ce   : > { %v1400_v9 = vadd.f32 %v1380_v44, %v1307_v27  ;;  %1771 = vmatmul.msk.f32.gmra.mxu3 %vm474_vm1, %v1762_v41  ;;  %v1308_v14 = vadd.f32 %v1290_v30, %v1223_v36  ;;  %v956_v44 = vadd.f32 %v2581_v59, %v863_v49  ;;  %v1124_v7 = vpop.f32.mrf.mxu3 }
 0x1d0   : > { %v1412_v15 = vmul.f32 %v2589_v48, %v1400_v9  ;;  %v1214_v13 = vpop.f32.mrf.mxu0  ;;  %v1041_v9 = vadd.f32 %v2583_v50, %v956_v44 }
 0x1d1   : > { %v1226_v41 = vadd.f32 %v1214_v13, %v1133_v63 }
 0x1d2   : > { %v1424_v3 = vadd.f32 %v2594_v39, %v1412_v15  ;;  %v1134_v52 = vadd.f32 %v1124_v7, %v1041_v9 }
 0x1d4   : > { %vm1432_vm7 = vcmp.ge.f32.partialorder %v1424_v3, 1.0 }
 0x1d5   : > { %v1383_v29 = vpop.f32.mrf.mxu2  ;;  %v1763_v6 = vsel %vm1432_vm7, 1.0, %v1907_v25  ;;  %v1293_v42 = vpop.f32.mrf.mxu1 }
 0x1d6   : > { %v1401_v33 = vadd.f32 %v1383_v29, %v1308_v14  ;;  %1772 = vmatmul.msk.f32.gmra.mxu3 %vm474_vm1, %v1763_v6  ;;  %v1309_v62 = vadd.f32 %v1293_v42, %v1224_v55  ;;  %v1841_v42 = vld [vmem:[%s2724_s8] ss:$0 sm:$0xff] }
 0x1d8   : > { %v1413_v4 = vmul.f32 %v2589_v48, %v1401_v33  ;;  %v1217_v26 = vpop.f32.mrf.mxu0 }
 0x1d9   : > { %v1227_v59 = vadd.f32 %v1217_v26, %v1134_v52 }
 0x1da   : > { %v1425_v28 = vadd.f32 %v2594_v39, %v1413_v4 }
 0x1dc   : > { %vm1433_vm8 = vcmp.ge.f32.partialorder %v1425_v28, 1.0 }
 0x1dd   : > { %v1386_v45 = vpop.f32.mrf.mxu2  ;;  %v1764_v40 = vsel %vm1433_vm8, 1.0, %v1907_v25  ;;  %v1296_v60 = vpop.f32.mrf.mxu1 }
 0x1de   : > { %v1402_v57 = vadd.f32 %v1386_v45, %v1309_v62  ;;  %1773 = vmatmul.msk.f32.gmra.mxu3 %vm474_vm1, %v1764_v40  ;;  %v1310_v2 = vadd.f32 %v1296_v60, %v1225_v8 }
 0x1e0   : > { %v1414_v12 = vmul.f32 %v2589_v48, %v1402_v57 }
 0x1e2   : > { %v1426_v43 = vadd.f32 %v2594_v39, %v1414_v12 }
 0x1e4   : > { %vm1434_vm10 = vcmp.ge.f32.partialorder %v1426_v43, 1.0 }
 0x1e5   : > { %v1389_v11 = vpop.f32.mrf.mxu2  ;;  %v1765_v32 = vsel %vm1434_vm10, 1.0, %v1907_v25  ;;  %v1299_v10 = vpop.f32.mrf.mxu1 }
 0x1e6   : > { %v1403_v27 = vadd.f32 %v1389_v11, %v1310_v2  ;;  %1774 = vmatmul.msk.f32.gmra.mxu3 %vm474_vm1, %v1765_v32  ;;  %v1311_v30 = vadd.f32 %v1299_v10, %v1226_v41 }
 0x1e8   : > { %v1415_v0 = vmul.f32 %v2589_v48, %v1403_v27 }
 0x1ea   : > { %v1427_v34 = vadd.f32 %v2594_v39, %v1415_v0 }
 0x1ec   : > { %vm1435_vm11 = vcmp.ge.f32.partialorder %v1427_v34, 1.0 }
 0x1ed   : > { %v1392_v35 = vpop.f32.mrf.mxu2  ;;  %v1766_v15 = vsel %vm1435_vm11, 1.0, %v1907_v25  ;;  %v1302_v3 = vpop.f32.mrf.mxu1 }
 0x1ee   : > { %v1404_v36 = vadd.f32 %v1392_v35, %v1311_v30  ;;  %1775 = vmatmul.msk.f32.gmra.mxu3 %vm474_vm1, %v1766_v15  ;;  %v1312_v14 = vadd.f32 %v1302_v3, %v1227_v59 }
 0x1f0   : > { %v1416_v5 = vmul.f32 %v2589_v48, %v1404_v36 }
 0x1f2   : > { %v1428_v58 = vadd.f32 %v2594_v39, %v1416_v5 }
 0x1f4   : > { %vm1436_vm14 = vcmp.ge.f32.partialorder %v1428_v58, 1.0 }
 0x1f5   : > { %v1395_v50 = vpop.f32.mrf.mxu2  ;;  %v1767_v38 = vsel %vm1436_vm14, 1.0, %v1907_v25 }
 0x1f6   : > { %v1405_v29 = vadd.f32 %v1395_v50, %v1312_v14  ;;  %1776 = vmatmul.msk.f32.gmra.mxu3 %vm474_vm1, %v1767_v38 }
 0x1f8   : > { %v1417_v6 = vmul.f32 %v2589_v48, %v1405_v29 }
 0x1fa   : > { %v1429_v56 = vadd.f32 %v2594_v39, %v1417_v6 }
 0x1fc   : > { %vm1437_vm3 = vcmp.ge.f32.partialorder %v1429_v56, 1.0 }
 0x1fd   : > { %v1768_v33 = vsel %vm1437_vm3, 1.0, %v1907_v25 }
 0x1fe   : > { %1777 = vmatmul.msk.f32.gmra.mxu3 %vm474_vm1, %v1768_v33 }
 0x249   : > { %v1499_v37 = vpop.f32.mrf.mxu3 }
 0x24a   : > { %v1527_v4 = vmul.f32 %v1841_v42, %v1499_v37 }
 0x24c   : > { %v1539_v48 = vadd.f32 %v1842_v46, %v1527_v4 }
 0x24e   : > { %v1547_v39 = vadd.f32 %v1539_v48, %v2065_v16 }
 0x250   : > { %vm1555_vm6 = vcmp.ge.f32.partialorder %v1547_v39, 1.0 }
 0x251   : > { %v1778_v51 = vsel %vm1555_vm6, 1.0, %v1907_v25  ;;  %v1502_v55 = vpop.f32.mrf.mxu3 }
 0x252   : > { %1579 = vst [vmem:[%s2658_s20] sm:$0xff] %v1778_v51  ;;  %v1528_v28 = vmul.f32 %v1841_v42, %v1502_v55 }
 0x254   : > { %v1540_v53 = vadd.f32 %v1842_v46, %v1528_v28 }
 0x256   : > { %v1548_v62 = vadd.f32 %v1540_v53, %v2068_v17 }
 0x258   : > { %vm1556_vm1 = vcmp.ge.f32.partialorder %v1548_v62, 1.0 }
 0x259   : > { %v1779_v45 = vsel %vm1556_vm1, 1.0, %v1907_v25  ;;  %v1505_v40 = vpop.f32.mrf.mxu3 }
 0x25a   : > { %1580 = vst [vmem:[%s2658_s20 + $0x8] sm:$0xff] %v1779_v45  ;;  %v1529_v16 = vmul.f32 %v1841_v42, %v1505_v40 }
 0x25c   : > { %v1541_v47 = vadd.f32 %v1842_v46, %v1529_v16 }
 0x25e   : > { %v1549_v57 = vadd.f32 %v1541_v47, %v2071_v18 }
 0x260   : > { %vm1557_vm12 = vcmp.ge.f32.partialorder %v1549_v57, 1.0 }
 0x261   : > { %v1780_v60 = vsel %vm1557_vm12, 1.0, %v1907_v25  ;;  %v1508_v1 = vpop.f32.mrf.mxu3 }
 0x262   : > { %1581 = vst [vmem:[%s2658_s20 + $0x10] sm:$0xff] %v1780_v60  ;;  %v1530_v54 = vmul.f32 %v1841_v42, %v1508_v1 }
 0x264   : > { %v1542_v12 = vadd.f32 %v1842_v46, %v1530_v54 }
 0x266   : > { %v1550_v17 = vadd.f32 %v1542_v12, %v2074_v19 }
 0x268   : > { %vm1558_vm15 = vcmp.ge.f32.partialorder %v1550_v17, 1.0 }
 0x269   : > { %v1781_v61 = vsel %vm1558_vm15, 1.0, %v1907_v25  ;;  %v1511_v20 = vpop.f32.mrf.mxu3 }
 0x26a   : > { %1582 = vst [vmem:[%s2658_s20 + $0x18] sm:$0xff] %v1781_v61  ;;  %v1531_v8 = vmul.f32 %v1841_v42, %v1511_v20 }
 0x26c   : > { %v1543_v43 = vadd.f32 %v1842_v46, %v1531_v8 }
 0x26e   : > { %v1551_v18 = vadd.f32 %v1543_v43, %v2082_v21 }
 0x270   : > { %vm1559_vm9 = vcmp.ge.f32.partialorder %v1551_v18, 1.0 }
 0x271   : > { %v1782_v31 = vsel %vm1559_vm9, 1.0, %v1907_v25  ;;  %v1514_v2 = vpop.f32.mrf.mxu3 }
 0x272   : > { %1583 = vst [vmem:[%s2658_s20 + $0x20] sm:$0xff] %v1782_v31  ;;  %v1532_v11 = vmul.f32 %v1841_v42, %v1514_v2 }
 0x274   : > { %v1544_v32 = vadd.f32 %v1842_v46, %v1532_v11 }
 0x276   : > { %v1552_v19 = vadd.f32 %v1544_v32, %v2085_v22 }
 0x278   : > { %vm1560_vm13 = vcmp.ge.f32.partialorder %v1552_v19, 1.0 }
 0x279   : > { %v1783_v63 = vsel %vm1560_vm13, 1.0, %v1907_v25  ;;  %v1517_v27 = vpop.f32.mrf.mxu3 }
 0x27a   : > { %1584 = vst [vmem:[%s2658_s20 + $0x28] sm:$0xff] %v1783_v63  ;;  %v1533_v10 = vmul.f32 %v1841_v42, %v1517_v27 }
 0x27c   : > { %v1545_v49 = vadd.f32 %v1842_v46, %v1533_v10 }
 0x27e   : > { %v1553_v21 = vadd.f32 %v1545_v49, %v2088_v23 }
 0x280   : > { %vm1561_vm2 = vcmp.ge.f32.partialorder %v1553_v21, 1.0 }
 0x281   : > { %v1784_v0 = vsel %vm1561_vm2, 1.0, %v1907_v25  ;;  %v1520_v13 = vpop.f32.mrf.mxu3 }
 0x282   : > { %1585 = vst [vmem:[%s2658_s20 + $0x30] sm:$0xff] %v1784_v0  ;;  %v1534_v22 = vmul.f32 %v1841_v42, %v1520_v13 }
 0x284   : > { %v1546_v44 = vadd.f32 %v1842_v46, %v1534_v22 }
 0x286   : > { %v1554_v41 = vadd.f32 %v1546_v44, %v2091_v24 }
 0x288   : > { %vm1562_vm4 = vcmp.ge.f32.partialorder %v1554_v41, 1.0 }
 0x289   : > { %v1785_v23 = vsel %vm1562_vm4, 1.0, %v1907_v25 }
 0x28a   : > { %1586 = vst [vmem:[%s2658_s20 + $0x38] sm:$0xff] %v1785_v23 }
 0x28b   : > { %1870 = shalt.err (!%p1867_p3)
}
 0x28c   : > { %s1908_s12 = smov 128   ;;  %s1909_s20 = smov 8  }
 0x28d   : > { %1795 = dma.vmem_to_hbm [thread:$0]  (%p2003_p5), %s1601_s15, 1024, %s1603_s22, %s1588_s17, %s1908_s12, %s1908_s12, %s1909_s20  }
 0x28e PF: > { %p1801_p4 = scmp.ge.s32.totalorder %s1905_s16, 2  ;;  %s1617_s26 = sand.u32 1, %s1893_s13  }
 0x28f   : > { %s1618_s27 = scalar_lea.sflag [#allocation4], %s1617_s26 }
 0x290   : > { %p1798_p7 = pnand %p1801_p4, %p2007_p6 }
 0x292   : > { %p1799_p8 = pneg %p1798_p7 }
 0x294   : > { %1888 = dma.done.wait (%p1799_p8), %s1618_s27, 1024  }
 0x295   : > { %1890 = vsyncadd (%p1799_p8), %s1618_s27, 4294966272  ;;  %s2768_s30 = sld [smem:[#allocation6_spill]]  ;;  %p20_p9 = scmp.ge.s32.totalorder %s1990_s19, 4  }
 0x296   : > { %s2769_s15 = sld [smem:[#allocation7_spill]]  ;;  %s2770_s13 = smov %s1897_s14 }
 0x297   : > { %s2772_s16 = smov %s1990_s19  ;;  %22 = sbr.rel (!%p20_p9) target bundleno = 3 (0x3), region = 95 }
 0x29b   : > { %s2771_s14 = smov %s2768_s30 }
 0x29c   :  { %1624 = vsyncpa [#allocation4], 1 }
 0x29d   :  { %1626 = vsyncpa [#allocation4 + $0x1], 1 }

</bundles_post_ra>
